<compile_context>
chip_gen: v6e
topology: v6e:2x2x1
jax: 0.10.0
libtpu: 0.0.40
codegen_flags: <defaults>
</compile_context>

<pallas_src>
import functools

import jax
import jax.numpy as jnp
from jax.experimental import pallas as pl
from jax.experimental.pallas import tpu as pltpu


TB_DEFAULT = 1024         # batch tile (rows per grid step) — sweep 512..2048
H3_PAD = 128              # fc3 output padded 64 -> 128
NCLS_PAD = 128            # fc4 output padded 10 -> 128
NEG_BIG = -1e30           # "-inf" for padded logits


def _round_up(n, m):
    return ((n + m - 1) // m) * m


def _choose_tb(B, tb_max):
    """Pick the batch tile: big (amortize ~0.35us/step), sublane-aligned, and
    capped so the grid has >=2 steps when B > tb_max (v7x megacore)."""
    tb_max = max(8, _round_up(tb_max, 8))
    if B <= tb_max:
        return _round_up(B, 8)
    half = _round_up(pl.cdiv(B, 2), 8)
    return min(tb_max, half)


def _vmem_bytes_estimate(TB, D_in):
    """Rough per-call VMEM budget (double-buffered x/outputs + resident params
    + f32/bf16 intermediates)."""
    x_bytes = TB * D_in * 4 * 2                              # f32 x tile, 2 buffers
    out_bytes = TB * (NCLS_PAD + 128) * 4 * 2                # two f32 outputs, 2 buffers
    w_elems = D_in * 256 + 256 * 128 + 128 * H3_PAD + H3_PAD * NCLS_PAD
    par_bytes = 2 * (2 * w_elems + 4 * (256 + 128 + H3_PAD + NCLS_PAD))
    interm = TB * (D_in * 2 + 256 * 6 + 128 * 6 * 2 + NCLS_PAD * 8)
    return x_bytes + out_bytes + par_bytes + interm


def _mlp_kernel(x_ref,
                w1_ref, b1_ref,
                w2_ref, b2_ref,
                w3_ref, b3_ref,
                w4_ref, b4_ref,
                out_ref, feat2_ref):
    # x arrives f32; cast to bf16 here on the VPU (hidden under the tile DMA)
    # instead of a separate wrapper-side XLA cast pass.
    x = x_ref[...].astype(jnp.bfloat16)                         # (TB, 784)

    # fc1 + ReLU  (dropout = identity in eval mode)
    h1 = jnp.dot(x, w1_ref[...], preferred_element_type=jnp.float32)
    h1 = jnp.maximum(h1 + b1_ref[...], 0.0)                     # (TB, 256) f32

    # fc2 + ReLU
    h2 = jnp.dot(h1.astype(jnp.bfloat16), w2_ref[...],
                 preferred_element_type=jnp.float32)
    h2 = jnp.maximum(h2 + b2_ref[...], 0.0)                     # (TB, 128) f32
    feat2_ref[...] = h2.astype(feat2_ref.dtype)                 # self.features_fc2

    # fc3 + ReLU  (output lane-padded to 128; padded cols are 0 after ReLU)
    h3 = jnp.dot(h2.astype(jnp.bfloat16), w3_ref[...],
                 preferred_element_type=jnp.float32)
    h3 = jnp.maximum(h3 + b3_ref[...], 0.0)                     # (TB, 128) f32

    # fc4 + log_softmax(dim=1)  (padded logit columns forced to -1e30 via b4)
    logits = jnp.dot(h3.astype(jnp.bfloat16), w4_ref[...],
                     preferred_element_type=jnp.float32)
    logits = logits + b4_ref[...]                               # (TB, 128) f32
    m = jnp.max(logits, axis=-1, keepdims=True)
    shifted = logits - m
    lse = jnp.log(jnp.sum(jnp.exp(shifted), axis=-1, keepdims=True))
    out_ref[...] = (shifted - lse).astype(out_ref.dtype)


def prepare_params(params):
    """One-time parameter prep (cast + lane-pad), hoisted out of the per-call
    path.  Weights are stored transposed as (in, out); biases as (1, out)."""
    (w1, b1), (w2, b2), (w3, b3), (w4, b4) = params
    n_cls = w4.shape[1]
    w1b = jnp.asarray(w1, jnp.bfloat16)                          # (784, 256)
    w2b = jnp.asarray(w2, jnp.bfloat16)                          # (256, 128)
    w3p = jnp.zeros((w3.shape[0], H3_PAD), jnp.bfloat16
                    ).at[:, :w3.shape[1]].set(jnp.asarray(w3, jnp.bfloat16))
    b3p = jnp.zeros((1, H3_PAD), jnp.float32
                    ).at[:, :w3.shape[1]].set(jnp.asarray(b3, jnp.float32).reshape(1, -1))
    w4p = jnp.zeros((H3_PAD, NCLS_PAD), jnp.bfloat16
                    ).at[:w4.shape[0], :n_cls].set(jnp.asarray(w4, jnp.bfloat16))
    b4p = jnp.full((1, NCLS_PAD), NEG_BIG, jnp.float32
                   ).at[:, :n_cls].set(jnp.asarray(b4, jnp.float32).reshape(1, -1))
    b1f = jnp.asarray(b1, jnp.float32).reshape(1, -1)
    b2f = jnp.asarray(b2, jnp.float32).reshape(1, -1)
    return (w1b, b1f, w2b, b2f, w3p, b3p, w4p, b4p)


def my_awesome_model_forward(x, prepared, *, n_cls=10, tb=TB_DEFAULT):
    """x: (B, 1, 28, 28) float32 (NCHW).  `prepared` from prepare_params().

    Returns (log_probs (B, n_cls), features_fc2 (B, 128))."""
    B = x.shape[0]
    x_flat = x.reshape(B, -1)                     # == x.view(B, -1); stays f32
    D_in = x_flat.shape[1]                        # 784
    w1b, b1f, w2b, b2f, w3p, b3p, w4p, b4p = prepared

    # ---- batch tiling (no jnp.pad: ragged last block masked on store) ------
    TB = _choose_tb(B, tb)
    grid = (pl.cdiv(B, TB),)

    const2d = lambda i: (0, 0)                    # weights/biases VMEM-resident
    in_specs = [
        pl.BlockSpec((TB, D_in), lambda i: (i, 0)),                 # x tile (f32)
        pl.BlockSpec(w1b.shape, const2d), pl.BlockSpec(b1f.shape, const2d),
        pl.BlockSpec(w2b.shape, const2d), pl.BlockSpec(b2f.shape, const2d),
        pl.BlockSpec(w3p.shape, const2d), pl.BlockSpec(b3p.shape, const2d),
        pl.BlockSpec(w4p.shape, const2d), pl.BlockSpec(b4p.shape, const2d),
    ]
    out_specs = (
        pl.BlockSpec((TB, NCLS_PAD), lambda i: (i, 0)),             # log_probs (padded)
        pl.BlockSpec((TB, 128), lambda i: (i, 0)),                  # features_fc2
    )
    out_shapes = (
        jax.ShapeDtypeStruct((B, NCLS_PAD), jnp.float32),
        jax.ShapeDtypeStruct((B, 128), jnp.float32),
    )

    # Only raise the scoped-VMEM limit when a large `tb` needs it (v7x: 64 MiB
    # physical, 32 MiB default scoped).
    vmem_est = _vmem_bytes_estimate(TB, D_in)
    vmem_limit = None
    if vmem_est > (30 << 20):
        vmem_limit = int(min(vmem_est + (4 << 20), 60 << 20))

    w_elems = D_in * 256 + 256 * 128 + 128 * H3_PAD + H3_PAD * NCLS_PAD
    param_bytes = 2 * w_elems + 4 * (256 + 128 + H3_PAD + NCLS_PAD)
    cost = pl.CostEstimate(
        flops=2 * B * w_elems,
        transcendentals=B * (NCLS_PAD + 1),
        bytes_accessed=B * D_in * 4 + param_bytes + B * (NCLS_PAD + 128) * 4,
    )

    log_probs_p, feat2 = pl.pallas_call(
        _mlp_kernel,
        out_shape=out_shapes,
        grid=grid,
        in_specs=in_specs,
        out_specs=out_specs,
        compiler_params=pltpu.CompilerParams(
            dimension_semantics=("parallel",),
            vmem_limit_bytes=vmem_limit),
        cost_estimate=cost,
    )(x_flat, w1b, b1f, w2b, b2f, w3p, b3p, w4p, b4p)

    # Lane slice only (batch dim is exact — no row padding).  Consumers that
    # can take the padded lane-dense (B, 128) buffer directly should do so to
    # skip this extra HBM pass (padded lanes hold ~-1e30, not valid logits).
    return log_probs_p[:, :n_cls], feat2


def init_params(key):
    """Deterministic init matching nn.Linear shapes (stored transposed as (in, out))."""
    dims = [(784, 256), (256, 128), (128, 64), (64, 10)]
    params = []
    for i, (fan_in, fan_out) in enumerate(dims):
        kw, kb, key = jax.random.split(jax.random.fold_in(key, i), 3)
        bound = 1.0 / (fan_in ** 0.5)
        w = jax.random.uniform(kw, (fan_in, fan_out), jnp.float32, -bound, bound)
        b = jax.random.uniform(kb, (1, fan_out), jnp.float32, -bound, bound)
        params.append((w, b))
    return params


if __name__ == "__main__":
    key = jax.random.PRNGKey(0)
    kx, kp = jax.random.split(key)

    B = 8
    x = jax.random.normal(kx, (B, 1, 28, 28), dtype=jnp.float32)   # NCHW like PyTorch
    params = init_params(kp)
    prepared = prepare_params(params)          # one-time cast/pad (hoisted)

    fwd = jax.jit(functools.partial(my_awesome_model_forward, n_cls=10, tb=TB_DEFAULT))
    log_probs, features_fc2 = fwd(x, prepared)
    jax.block_until_ready((log_probs, features_fc2))

    assert log_probs.shape == (B, 10)
    assert features_fc2.shape == (B, 128)
    # log_softmax rows should (numerically) exponentiate-and-sum to 1
    row_sums = jnp.sum(jnp.exp(log_probs), axis=1)
    assert bool(jnp.all(jnp.abs(row_sums - 1.0) < 1e-3))
    assert bool(jnp.all(jnp.isfinite(log_probs)))
    assert bool(jnp.all(features_fc2 >= 0.0))

    print("KERNEL_OK")
</pallas_src>

<mosaic_0001>
module attributes {stable_mosaic.version = 11 : i64} {
  func.func @_mlp_kernel(%arg0: i32, %arg1: memref<8x784xf32, #tpu.memory_space<vmem>>, %arg2: memref<784x256xbf16, #tpu.memory_space<vmem>>, %arg3: memref<1x256xf32, #tpu.memory_space<vmem>>, %arg4: memref<256x128xbf16, #tpu.memory_space<vmem>>, %arg5: memref<1x128xf32, #tpu.memory_space<vmem>>, %arg6: memref<128x128xbf16, #tpu.memory_space<vmem>>, %arg7: memref<1x128xf32, #tpu.memory_space<vmem>>, %arg8: memref<128x128xbf16, #tpu.memory_space<vmem>>, %arg9: memref<1x128xf32, #tpu.memory_space<vmem>>, %arg10: memref<8x128xf32, #tpu.memory_space<vmem>>, %arg11: memref<8x128xf32, #tpu.memory_space<vmem>>) attributes {dimension_semantics = [#tpu.dimension_semantics<parallel>], iteration_bounds = array<i64: 1>, scalar_prefetch = 0 : i64, scratch_operands = 0 : i64, tpu.core_type = #tpu.core_type<tc>, window_params = [{transform_indices = @transform_0, window_bounds = array<i64: 8, 784>}, {pipeline_mode = #tpu.pipeline_mode<synchronous>, transform_indices = @transform_1, window_bounds = array<i64: 784, 256>}, {pipeline_mode = #tpu.pipeline_mode<synchronous>, transform_indices = @transform_2, window_bounds = array<i64: 1, 256>}, {pipeline_mode = #tpu.pipeline_mode<synchronous>, transform_indices = @transform_3, window_bounds = array<i64: 256, 128>}, {pipeline_mode = #tpu.pipeline_mode<synchronous>, transform_indices = @transform_4, window_bounds = array<i64: 1, 128>}, {pipeline_mode = #tpu.pipeline_mode<synchronous>, transform_indices = @transform_5, window_bounds = array<i64: 128, 128>}, {pipeline_mode = #tpu.pipeline_mode<synchronous>, transform_indices = @transform_6, window_bounds = array<i64: 1, 128>}, {pipeline_mode = #tpu.pipeline_mode<synchronous>, transform_indices = @transform_7, window_bounds = array<i64: 128, 128>}, {pipeline_mode = #tpu.pipeline_mode<synchronous>, transform_indices = @transform_8, window_bounds = array<i64: 1, 128>}, {transform_indices = @transform_9, window_bounds = array<i64: 8, 128>}, {transform_indices = @transform_10, window_bounds = array<i64: 8, 128>}]} {
    %c0 = arith.constant 0 : index
    %c0_0 = arith.constant 0 : index
    %0 = vector.load %arg1[%c0, %c0_0] : memref<8x784xf32, #tpu.memory_space<vmem>>, vector<8x784xf32>
    %1 = arith.truncf %0 : vector<8x784xf32> to vector<8x784xbf16>
    %c0_1 = arith.constant 0 : index
    %c0_2 = arith.constant 0 : index
    %2 = vector.load %arg2[%c0_1, %c0_2] : memref<784x256xbf16, #tpu.memory_space<vmem>>, vector<784x256xbf16>
    %cst = arith.constant dense<0.000000e+00> : vector<8x256xf32>
    %3 = tpu.matmul %1, %2, %cst {dimension_numbers = #tpu.dot_dimension_numbers<[1], [0], [0], [1], [0, 0, 1, 1], [], []>} : vector<8x784xbf16>, vector<784x256xbf16>, vector<8x256xf32> -> vector<8x256xf32>
    %c0_3 = arith.constant 0 : index
    %c0_4 = arith.constant 0 : index
    %4 = vector.load %arg3[%c0_3, %c0_4] : memref<1x256xf32, #tpu.memory_space<vmem>>, vector<1x256xf32>
    %5 = vector.broadcast %4 : vector<1x256xf32> to vector<8x256xf32>
    %6 = arith.addf %3, %5 : vector<8x256xf32>
    %cst_5 = arith.constant 0.000000e+00 : f32
    %7 = vector.broadcast %cst_5 : f32 to vector<8x256xf32>
    %8 = arith.maximumf %6, %7 : vector<8x256xf32>
    %9 = arith.truncf %8 : vector<8x256xf32> to vector<8x256xbf16>
    %c0_6 = arith.constant 0 : index
    %c0_7 = arith.constant 0 : index
    %10 = vector.load %arg4[%c0_6, %c0_7] : memref<256x128xbf16, #tpu.memory_space<vmem>>, vector<256x128xbf16>
    %cst_8 = arith.constant dense<0.000000e+00> : vector<8x128xf32>
    %11 = tpu.matmul %9, %10, %cst_8 {dimension_numbers = #tpu.dot_dimension_numbers<[1], [0], [0], [1], [0, 0, 1, 1], [], []>} : vector<8x256xbf16>, vector<256x128xbf16>, vector<8x128xf32> -> vector<8x128xf32>
    %c0_9 = arith.constant 0 : index
    %c0_10 = arith.constant 0 : index
    %12 = vector.load %arg5[%c0_9, %c0_10] : memref<1x128xf32, #tpu.memory_space<vmem>>, vector<1x128xf32>
    %13 = vector.broadcast %12 : vector<1x128xf32> to vector<8x128xf32>
    %14 = arith.addf %11, %13 : vector<8x128xf32>
    %cst_11 = arith.constant 0.000000e+00 : f32
    %15 = vector.broadcast %cst_11 : f32 to vector<8x128xf32>
    %16 = arith.maximumf %14, %15 : vector<8x128xf32>
    %c0_12 = arith.constant 0 : index
    %c0_13 = arith.constant 0 : index
    %17 = vector.load %arg11[%c0_12, %c0_13] : memref<8x128xf32, #tpu.memory_space<vmem>>, vector<8x128xf32>
    tpu.vector_store %arg11[%c0_12, %c0_13], %16 {strides = array<i32>} : memref<8x128xf32, #tpu.memory_space<vmem>>, vector<8x128xf32>,
    %18 = arith.truncf %16 : vector<8x128xf32> to vector<8x128xbf16>
    %c0_14 = arith.constant 0 : index
    %c0_15 = arith.constant 0 : index
    %19 = vector.load %arg6[%c0_14, %c0_15] : memref<128x128xbf16, #tpu.memory_space<vmem>>, vector<128x128xbf16>
    %cst_16 = arith.constant dense<0.000000e+00> : vector<8x128xf32>
    %20 = tpu.matmul %18, %19, %cst_16 {dimension_numbers = #tpu.dot_dimension_numbers<[1], [0], [0], [1], [0, 0, 1, 1], [], []>} : vector<8x128xbf16>, vector<128x128xbf16>, vector<8x128xf32> -> vector<8x128xf32>
    %c0_17 = arith.constant 0 : index
    %c0_18 = arith.constant 0 : index
    %21 = vector.load %arg7[%c0_17, %c0_18] : memref<1x128xf32, #tpu.memory_space<vmem>>, vector<1x128xf32>
    %22 = vector.broadcast %21 : vector<1x128xf32> to vector<8x128xf32>
    %23 = arith.addf %20, %22 : vector<8x128xf32>
    %cst_19 = arith.constant 0.000000e+00 : f32
    %24 = vector.broadcast %cst_19 : f32 to vector<8x128xf32>
    %25 = arith.maximumf %23, %24 : vector<8x128xf32>
    %26 = arith.truncf %25 : vector<8x128xf32> to vector<8x128xbf16>
    %c0_20 = arith.constant 0 : index
    %c0_21 = arith.constant 0 : index
    %27 = vector.load %arg8[%c0_20, %c0_21] : memref<128x128xbf16, #tpu.memory_space<vmem>>, vector<128x128xbf16>
    %cst_22 = arith.constant dense<0.000000e+00> : vector<8x128xf32>
    %28 = tpu.matmul %26, %27, %cst_22 {dimension_numbers = #tpu.dot_dimension_numbers<[1], [0], [0], [1], [0, 0, 1, 1], [], []>} : vector<8x128xbf16>, vector<128x128xbf16>, vector<8x128xf32> -> vector<8x128xf32>
    %c0_23 = arith.constant 0 : index
    %c0_24 = arith.constant 0 : index
    %29 = vector.load %arg9[%c0_23, %c0_24] : memref<1x128xf32, #tpu.memory_space<vmem>>, vector<1x128xf32>
    %30 = vector.broadcast %29 : vector<1x128xf32> to vector<8x128xf32>
    %31 = arith.addf %28, %30 : vector<8x128xf32>
    %cst_25 = arith.constant dense<0xFF800000> : vector<8xf32>
    %32 = vector.multi_reduction <maximumf>, %31, %cst_25 [1] : vector<8x128xf32> to vector<8xf32>
    %33 = vector.shape_cast %32 : vector<8xf32> to vector<8x1xf32>
    %34 = vector.broadcast %33 : vector<8x1xf32> to vector<8x128xf32>
    %35 = arith.subf %31, %34 : vector<8x128xf32>
    %36 = math.exp %35 : vector<8x128xf32>
    %cst_26 = arith.constant dense<0.000000e+00> : vector<8xf32>
    %37 = vector.multi_reduction <add>, %36, %cst_26 [1] : vector<8x128xf32> to vector<8xf32>
    %38 = vector.shape_cast %37 : vector<8xf32> to vector<8x1xf32>
    %39 = math.log %38 : vector<8x1xf32>
    %40 = vector.broadcast %39 : vector<8x1xf32> to vector<8x128xf32>
    %41 = arith.subf %35, %40 : vector<8x128xf32>
    %c0_27 = arith.constant 0 : index
    %c0_28 = arith.constant 0 : index
    %42 = vector.load %arg10[%c0_27, %c0_28] : memref<8x128xf32, #tpu.memory_space<vmem>>, vector<8x128xf32>
    tpu.vector_store %arg10[%c0_27, %c0_28], %41 {strides = array<i32>} : memref<8x128xf32, #tpu.memory_space<vmem>>, vector<8x128xf32>,
    return
  }
  func.func @transform_0(%arg0: i32) -> (i32, i32) {
    %c0_i32 = arith.constant 0 : i32
    %c0_i32_0 = arith.constant 0 : i32
    return %arg0, %c0_i32 : i32, i32
  }
  func.func @transform_1(%arg0: i32) -> (i32, i32) {
    %c0_i32 = arith.constant 0 : i32
    %c0_i32_0 = arith.constant 0 : i32
    %c0_i32_1 = arith.constant 0 : i32
    return %c0_i32, %c0_i32_0 : i32, i32
  }
  func.func @transform_2(%arg0: i32) -> (i32, i32) {
    %c0_i32 = arith.constant 0 : i32
    %c0_i32_0 = arith.constant 0 : i32
    %c0_i32_1 = arith.constant 0 : i32
    return %c0_i32, %c0_i32_0 : i32, i32
  }
  func.func @transform_3(%arg0: i32) -> (i32, i32) {
    %c0_i32 = arith.constant 0 : i32
    %c0_i32_0 = arith.constant 0 : i32
    %c0_i32_1 = arith.constant 0 : i32
    return %c0_i32, %c0_i32_0 : i32, i32
  }
  func.func @transform_4(%arg0: i32) -> (i32, i32) {
    %c0_i32 = arith.constant 0 : i32
    %c0_i32_0 = arith.constant 0 : i32
    %c0_i32_1 = arith.constant 0 : i32
    return %c0_i32, %c0_i32_0 : i32, i32
  }
  func.func @transform_5(%arg0: i32) -> (i32, i32) {
    %c0_i32 = arith.constant 0 : i32
    %c0_i32_0 = arith.constant 0 : i32
    %c0_i32_1 = arith.constant 0 : i32
    return %c0_i32, %c0_i32_0 : i32, i32
  }
  func.func @transform_6(%arg0: i32) -> (i32, i32) {
    %c0_i32 = arith.constant 0 : i32
    %c0_i32_0 = arith.constant 0 : i32
    %c0_i32_1 = arith.constant 0 : i32
    return %c0_i32, %c0_i32_0 : i32, i32
  }
  func.func @transform_7(%arg0: i32) -> (i32, i32) {
    %c0_i32 = arith.constant 0 : i32
    %c0_i32_0 = arith.constant 0 : i32
    %c0_i32_1 = arith.constant 0 : i32
    return %c0_i32, %c0_i32_0 : i32, i32
  }
  func.func @transform_8(%arg0: i32) -> (i32, i32) {
    %c0_i32 = arith.constant 0 : i32
    %c0_i32_0 = arith.constant 0 : i32
    %c0_i32_1 = arith.constant 0 : i32
    return %c0_i32, %c0_i32_0 : i32, i32
  }
  func.func @transform_9(%arg0: i32) -> (i32, i32) {
    %c0_i32 = arith.constant 0 : i32
    %c0_i32_0 = arith.constant 0 : i32
    return %arg0, %c0_i32 : i32, i32
  }
  func.func @transform_10(%arg0: i32) -> (i32, i32) {
    %c0_i32 = arith.constant 0 : i32
    %c0_i32_0 = arith.constant 0 : i32
    return %arg0, %c0_i32 : i32, i32
  }
}

</mosaic_0001>

<bundles_post_ra>
// kernel: my_awesome_model_forward.1
= control target key start
LH: loop header
LB: loop body
LE: loop exit
PB: predicated region body
PF: predicated region fallthrough
CT: control target
= control target key end

     0   :  { %16 = vsyncpa [#allocation3], 0  ;;  %s2248_s0 = inlined_call_operand.vmem [shape: f32[8,784], index: 0, kind: input, shape index: {}]   ;;  %s2249_s1 = inlined_call_operand.vmem [shape: bf16[784,256], index: 1, kind: input, shape index: {}]   ;;  %s2250_s2 = inlined_call_operand.vmem [shape: f32[1,256], index: 2, kind: input, shape index: {}]   ;;  %s2251_s3 = inlined_call_operand.hbm [shape: bf16[256,128], index: 3, kind: input, shape index: {}]   ;;  %s2252_s4 = inlined_call_operand.vmem [shape: f32[1,128], index: 4, kind: input, shape index: {}]   ;;  %s2253_s5 = inlined_call_operand.hbm [shape: bf16[128,128], index: 5, kind: input, shape index: {}]   ;;  %s2254_s6 = inlined_call_operand.vmem [shape: f32[1,128], index: 6, kind: input, shape index: {}]   ;;  %s2255_s7 = inlined_call_operand.hbm [shape: bf16[128,128], index: 7, kind: input, shape index: {}]   ;;  %s2256_s8 = inlined_call_operand.vmem [shape: f32[1,128], index: 8, kind: input, shape index: {}]   ;;  %s2257_s9 = inlined_call_operand.hbm [shape: f32[8,128], index: 9, kind: output, shape index: {0}]   ;;  %s2258_s10 = inlined_call_operand.hbm [shape: f32[8,128], index: 10, kind: output, shape index: {1}]  }
   0x1   :  { %17 = vsyncpa [#allocation6], 0 }
   0x2   :  { %18 = vsyncpa [#allocation4], 0 }
   0x3   :  { %19 = vsyncpa [#allocation10], 0  ;;  %s1822_s13 = smov [#allocation5]   ;;  %s1823_s15 = smov [#allocation2]  }
   0x4   :  { %s45_s14 = sshll.u32 %s1822_s13, 4  ;;  %s31_s16 = sshll.u32 %s1823_s15, 4  ;;  %s46_s14 = int_to_ptr.vmem [resolvable:$true] %s45_s14  ;;  %s32_s16 = int_to_ptr.vmem [resolvable:$true] %s31_s16 }
   0x5   :  { %s1722_s17 = scalar_lea.vmem %s46_s14, 1024  ;;  %p1727_p1 = scmp.lt.s32.totalorder %s46_s14, %s46_s14 }
   0x6   :  { %p1723_p0 = scmp.ne.s32.totalorder %s46_s14, %s1722_s17  ;;  %p1728_p2 = scmp.lt.s32.totalorder %s1722_s17, %s1722_s17 }
   0x8   :  { %p1729_p3 = por %p1728_p2, %p1727_p1 }
   0xa   :  { %p1730_p4 = pnand %p1729_p3, %p1723_p0 }
   0xc   :  { %1733 = shalt.err (!%p1730_p4)
}
   0xd   :  { %s1824_s18 = smov 64   ;;  %s1825_s19 = smov 4  }
   0xe   :  { %51 = dma.hbm_to_vmem [thread:$0]  %s2253_s5, 1024, %s46_s14, [#allocation6], %s1824_s18, %s1824_s18, %s1825_s19  }
   0xf   :  { %s1742_s22 = scalar_lea.vmem %s32_s16, 2048  ;;  %p1747_p6 = scmp.lt.s32.totalorder %s32_s16, %s32_s16 }
  0x10   :  { %p1743_p5 = scmp.ne.s32.totalorder %s32_s16, %s1742_s22  ;;  %p1748_p7 = scmp.lt.s32.totalorder %s1742_s22, %s1742_s22 }
  0x12   :  { %p1749_p8 = por %p1748_p7, %p1747_p6 }
  0x14   :  { %p1750_p9 = pnand %p1749_p8, %p1743_p5 }
  0x16   :  { %1753 = shalt.err (!%p1750_p9)
}
  0x17   :  { %37 = dma.hbm_to_vmem [thread:$0]  %s2251_s3, 2048, %s32_s16, [#allocation3], %s1824_s18, %s1824_s18, %s1825_s19  }
  0x18   :  { %s1826_s25 = smov [#allocation7]  }
  0x19   :  { %s59_s26 = sshll.u32 %s1826_s25, 4  ;;  %s60_s26 = int_to_ptr.vmem [resolvable:$true] %s59_s26 }
  0x1a   :  { %s1762_s27 = scalar_lea.vmem %s60_s26, 1024  ;;  %p1767_p11 = scmp.lt.s32.totalorder %s60_s26, %s60_s26 }
  0x1b   :  { %p1763_p10 = scmp.ne.s32.totalorder %s60_s26, %s1762_s27  ;;  %p1768_p12 = scmp.lt.s32.totalorder %s1762_s27, %s1762_s27 }
  0x1d   :  { %p1769_p13 = por %p1768_p12, %p1767_p11 }
  0x1f   :  { %p1770_p0 = pnand %p1769_p13, %p1763_p10 }
  0x21   :  { %1773 = shalt.err (!%p1770_p0)
}
  0x22   :  { %65 = dma.hbm_to_vmem [thread:$0]  %s2255_s7, 1024, %s60_s26, [#allocation6], %s1824_s18, %s1824_s18, %s1825_s19  }
  0x23   :  { %1814 = dma.done.wait [#allocation3], 2048  }
  0x24   :  { %1815 = vsyncadd [#allocation3], 4294965248 }
  0x25   :  { %1816 = dma.done.wait [#allocation6], 2048  }
  0x26   :  { %1817 = vsyncadd [#allocation6], 4294965248  ;;  %v1531_v0 = vld [vmem:[%s2249_s1 + $0x74] ss:$8 sps:$4 sm:$0xff]   ;;  %v1533_v1 = vld [vmem:[%s2249_s1 + $0x70] ss:$8 sps:$4 sm:$0xff]  }
  0x27   :  { %696 = vmatprep.subr.bf16.mxu0 %v1531_v0  ;;  %v1534_v2 = vld [vmem:[%s2249_s1 + $0x174] ss:$8 sps:$4 sm:$0xff]   ;;  %v1536_v3 = vld [vmem:[%s2249_s1 + $0x170] ss:$8 sps:$4 sm:$0xff]   ;;  %v1537_v4 = vld [vmem:[%s2249_s1 + $0x64] ss:$8 sps:$4 sm:$0xff]  }
  0x28   :  { %697 = vmatpush1.bf16.msra.mxu0 %v1533_v1  ;;  %v1539_v5 = vld [vmem:[%s2249_s1 + $0x60] ss:$8 sps:$4 sm:$0xff]   ;;  %737 = vmatprep.subr.bf16.mxu1 %v1534_v2  ;;  %v1540_v6 = vld [vmem:[%s2249_s1 + $0x164] ss:$8 sps:$4 sm:$0xff]   ;;  %v1543_v8 = vld [vmem:[%s2249_s1 + $0x54] ss:$8 sps:$4 sm:$0xff]  }
  0x29   :  { %738 = vmatpush1.bf16.msra.mxu1 %v1536_v3  ;;  %698 = vmatprep.subr.bf16.mxu0 %v1537_v4  ;;  %v1542_v7 = vld [vmem:[%s2249_s1 + $0x160] ss:$8 sps:$4 sm:$0xff]   ;;  %v1545_v9 = vld [vmem:[%s2249_s1 + $0x50] ss:$8 sps:$4 sm:$0xff]   ;;  %v1546_v10 = vld [vmem:[%s2249_s1 + $0x154] ss:$8 sps:$4 sm:$0xff]  }
  0x2a   :  { %739 = vmatprep.subr.bf16.mxu1 %v1540_v6  ;;  %v1549_v11 = vld [vmem:[%s2249_s1 + $0x44] ss:$8 sps:$4 sm:$0xff]   ;;  %v1548_v12 = vld [vmem:[%s2249_s1 + $0x150] ss:$8 sps:$4 sm:$0xff]   ;;  %v1551_v14 = vld [vmem:[%s2249_s1 + $0x40] ss:$8 sps:$4 sm:$0xff]  }
  0x2b   :  { %v1552_v13 = vld [vmem:[%s2249_s1 + $0x144] ss:$8 sps:$4 sm:$0xff]   ;;  %v1555_v15 = vld [vmem:[%s2249_s1 + $0x34] ss:$8 sps:$4 sm:$0xff]   ;;  %v1554_v16 = vld [vmem:[%s2249_s1 + $0x140] ss:$8 sps:$4 sm:$0xff]  }
  0x2c   :  { %699 = vmatpush1.bf16.msra.mxu0 %v1539_v5  ;;  %v1558_v17 = vld [vmem:[%s2249_s1 + $0x134] ss:$8 sps:$4 sm:$0xff]   ;;  %v1557_v18 = vld [vmem:[%s2249_s1 + $0x30] ss:$8 sps:$4 sm:$0xff]   ;;  %v1561_v19 = vld [vmem:[%s2249_s1 + $0x24] ss:$8 sps:$4 sm:$0xff]  }
  0x2d   :  { %700 = vmatprep.subr.bf16.mxu0 %v1543_v8  ;;  %740 = vmatpush1.bf16.msra.mxu1 %v1542_v7  ;;  %v1560_v20 = vld [vmem:[%s2249_s1 + $0x130] ss:$8 sps:$4 sm:$0xff]   ;;  %v1564_v21 = vld [vmem:[%s2249_s1 + $0x124] ss:$8 sps:$4 sm:$0xff]   ;;  %v1563_v22 = vld [vmem:[%s2249_s1 + $0x20] ss:$8 sps:$4 sm:$0xff]  }
  0x2e   :  { %741 = vmatprep.subr.bf16.mxu1 %v1546_v10  ;;  %v1567_v23 = vld [vmem:[%s2249_s1 + $0x14] ss:$8 sps:$4 sm:$0xff]   ;;  %v1566_v24 = vld [vmem:[%s2249_s1 + $0x120] ss:$8 sps:$4 sm:$0xff]   ;;  %v1569_v26 = vld [vmem:[%s2249_s1 + $0x10] ss:$8 sps:$4 sm:$0xff]  }
  0x2f   :  { %v1570_v25 = vld [vmem:[%s2249_s1 + $0x114] ss:$8 sps:$4 sm:$0xff]   ;;  %v1573_v27 = vld [vmem:[%s2249_s1 + $0x4] ss:$8 sps:$4 sm:$0xff]   ;;  %v1572_v28 = vld [vmem:[%s2249_s1 + $0x110] ss:$8 sps:$4 sm:$0xff]  }
  0x30   :  { %701 = vmatpush1.bf16.msra.mxu0 %v1545_v9  ;;  %v1576_v29 = vld [vmem:[%s2249_s1 + $0x104] ss:$8 sps:$4 sm:$0xff]   ;;  %v1575_v30 = vld [vmem:[%s2249_s1] ss:$8 sps:$4 sm:$0xff]   ;;  %v1579_v31 = vld [vmem:[%s2249_s1 + $0xf4] ss:$8 sps:$4 sm:$0xff]  }
  0x31   :  { %702 = vmatprep.subr.bf16.mxu0 %v1549_v11  ;;  %742 = vmatpush1.bf16.msra.mxu1 %v1548_v12  ;;  %v1578_v32 = vld [vmem:[%s2249_s1 + $0x100] ss:$8 sps:$4 sm:$0xff]   ;;  %v1582_v33 = vld [vmem:[%s2249_s1 + $0x1f4] ss:$8 sps:$4 sm:$0xff]   ;;  %v1581_v34 = vld [vmem:[%s2249_s1 + $0xf0] ss:$8 sps:$4 sm:$0xff]  }
  0x32   :  { %743 = vmatprep.subr.bf16.mxu1 %v1552_v13  ;;  %v1585_v35 = vld [vmem:[%s2249_s1 + $0xe4] ss:$8 sps:$4 sm:$0xff]   ;;  %v1584_v36 = vld [vmem:[%s2249_s1 + $0x1f0] ss:$8 sps:$4 sm:$0xff]   ;;  %v1587_v38 = vld [vmem:[%s2249_s1 + $0xe0] ss:$8 sps:$4 sm:$0xff]  }
  0x33   :  { %v1588_v37 = vld [vmem:[%s2249_s1 + $0x1e4] ss:$8 sps:$4 sm:$0xff]   ;;  %v1591_v39 = vld [vmem:[%s2249_s1 + $0xd4] ss:$8 sps:$4 sm:$0xff]   ;;  %v1590_v40 = vld [vmem:[%s2249_s1 + $0x1e0] ss:$8 sps:$4 sm:$0xff]  }
  0x34   :  { %703 = vmatpush1.bf16.msra.mxu0 %v1551_v14  ;;  %v1594_v41 = vld [vmem:[%s2249_s1 + $0x1d4] ss:$8 sps:$4 sm:$0xff]   ;;  %v1593_v42 = vld [vmem:[%s2249_s1 + $0xd0] ss:$8 sps:$4 sm:$0xff]   ;;  %v1597_v43 = vld [vmem:[%s2249_s1 + $0xc4] ss:$8 sps:$4 sm:$0xff]  }
  0x35   :  { %704 = vmatprep.subr.bf16.mxu0 %v1555_v15  ;;  %744 = vmatpush1.bf16.msra.mxu1 %v1554_v16  ;;  %v1596_v44 = vld [vmem:[%s2249_s1 + $0x1d0] ss:$8 sps:$4 sm:$0xff]   ;;  %v1600_v45 = vld [vmem:[%s2249_s1 + $0x1c4] ss:$8 sps:$4 sm:$0xff]   ;;  %v1599_v47 = vld [vmem:[%s2249_s1 + $0xc0] ss:$8 sps:$4 sm:$0xff]  }
  0x36   :  { %745 = vmatprep.subr.bf16.mxu1 %v1558_v17  ;;  %v79_v46 = vld [vmem:[%s2248_s0 + $0x8] sm:$0xff]  ;;  %v1603_v49 = vld [vmem:[%s2249_s1 + $0xb4] ss:$8 sps:$4 sm:$0xff]   ;;  %v1605_v54 = vld [vmem:[%s2249_s1 + $0xb0] ss:$8 sps:$4 sm:$0xff]   ;;  %vm692_vm0 = vcmask 130048  }
  0x37   :  { %v86_v48 = vpack.c.bf16 %v79_v46, %v79_v46  ;;  %v81_v50 = vld [vmem:[%s2248_s0 + $0x18] sm:$0xff]  ;;  %v1602_v51 = vld [vmem:[%s2249_s1 + $0x1c0] ss:$8 sps:$4 sm:$0xff]   ;;  %v1609_v55 = vld [vmem:[%s2249_s1 + $0xa4] ss:$8 sps:$4 sm:$0xff]   ;;  %vm1829_vm1 = vmmov 0  }
  0x38   :  { %705 = vmatpush1.bf16.msra.mxu0 %v1557_v18  ;;  %v88_v52 = vpack.c.bf16 %v81_v50, %v81_v50  ;;  %v1606_v53 = vld [vmem:[%s2249_s1 + $0x1b4] ss:$8 sps:$4 sm:$0xff]   ;;  %v1608_v56 = vld [vmem:[%s2249_s1 + $0x1b0] ss:$8 sps:$4 sm:$0xff]   ;;  %v1612_v57 = vld [vmem:[%s2249_s1 + $0x1a4] ss:$8 sps:$4 sm:$0xff]  }
  0x39   :  { %706 = vmatprep.subr.bf16.mxu0 %v1561_v19  ;;  %746 = vmatpush1.bf16.msra.mxu1 %v1560_v20  ;;  %v1611_v58 = vld [vmem:[%s2249_s1 + $0xa0] ss:$8 sps:$4 sm:$0xff]   ;;  %v1615_v59 = vld [vmem:[%s2249_s1 + $0x94] ss:$8 sps:$4 sm:$0xff]   ;;  %v1617_v62 = vld [vmem:[%s2249_s1 + $0x90] ss:$8 sps:$4 sm:$0xff]  }
  0x3a   :  { %747 = vmatprep.subr.bf16.mxu1 %v1564_v21  ;;  %728 = vmatprep.mubr.bf16.mxu0 %v86_v48  ;;  %v1614_v60 = vld [vmem:[%s2249_s1 + $0x1a0] ss:$8 sps:$4 sm:$0xff]   ;;  %v1618_v61 = vld [vmem:[%s2249_s1 + $0x194] ss:$8 sps:$4 sm:$0xff]   ;;  %v1621_v63 = vld [vmem:[%s2249_s1 + $0x84] ss:$8 sps:$4 sm:$0xff]  }
  0x3b   :  { %769 = vmatprep.mubr.bf16.mxu1 %v88_v52  ;;  %v1620_v0 = vld [vmem:[%s2249_s1 + $0x190] ss:$8 sps:$4 sm:$0xff]   ;;  %v1623_v1 = vld [vmem:[%s2249_s1 + $0x80] ss:$8 sps:$4 sm:$0xff]   ;;  %v1624_v2 = vld [vmem:[%s2249_s1 + $0x184] ss:$8 sps:$4 sm:$0xff]  }
  0x3c   :  { %707 = vmatpush1.bf16.msra.mxu0 %v1563_v22  ;;  %v1626_v3 = vld [vmem:[%s2249_s1 + $0x180] ss:$8 sps:$4 sm:$0xff]   ;;  %v1629_v5 = vld [vmem:[%s2249_s1 + $0x274] ss:$8 sps:$4 sm:$0xff]   ;;  %v1627_v8 = vld [vmem:[%s2249_s1 + $0x270] ss:$8 sps:$4 sm:$0xff]  }
  0x3d   :  { %708 = vmatprep.subr.bf16.mxu0 %v1567_v23  ;;  %748 = vmatpush1.bf16.msra.mxu1 %v1566_v24  ;;  %v78_v4 = vld [vmem:[%s2248_s0] sm:$0xff]  ;;  %v80_v6 = vld [vmem:[%s2248_s0 + $0x10] sm:$0xff]  ;;  %v83_v16 = vld [vmem:[%s2248_s0 + $0x28] sm:$0xff]  ;;  %v1827_v19 = vmov 0  }
  0x3e   :  { %749 = vmatprep.subr.bf16.mxu1 %v1570_v25  ;;  %v85_v7 = vpack.c.bf16 %v78_v4, %v78_v4  ;;  %v1632_v9 = vld [vmem:[%s2249_s1 + $0x264] ss:$8 sps:$4 sm:$0xff]   ;;  %v87_v10 = vpack.c.bf16 %v80_v6, %v80_v6  ;;  %v1672_v11 = vld [vmem:[%s2249_s1 + $0x300] ss:$8 sps:$4 sm:$0xff]   ;;  %v1635_v14 = vld [vmem:[%s2249_s1 + $0x254] ss:$8 sps:$4 sm:$0xff]   ;;  %v90_v17 = vpack.c.bf16 %v83_v16, %v83_v16 }
  0x3f   :  { %v1674_v12 = vld [vmem:[%s2249_s1 + $0x304] ss:$8 sps:$4 sm:$0xff]   ;;  %v1630_v13 = vld [vmem:[%s2249_s1 + $0x260] ss:$8 sps:$4 sm:$0xff]   ;;  %v84_v15 = vld [vmem:[%s2248_s0 + $0x30] sm:$0xff] }
  0x40   :  { %709 = vmatpush1.bf16.msra.mxu0 %v1569_v26  ;;  %v1633_v18 = vld [vmem:[%s2249_s1 + $0x250] ss:$8 sps:$4 sm:$0xff]   ;;  %v1638_v20 = vld [vmem:[%s2249_s1 + $0x244] ss:$8 sps:$4 sm:$0xff]   ;;  %v91_v21 = vpack.c.bf16 %v84_v15, %v84_v15  ;;  %v1636_v22 = vld [vmem:[%s2249_s1 + $0x240] ss:$8 sps:$4 sm:$0xff]  }
  0x41   :  { %710 = vmatprep.subr.bf16.mxu0 %v1573_v27  ;;  %750 = vmatpush1.bf16.msra.mxu1 %v1572_v28  ;;  %v1641_v23 = vld [vmem:[%s2249_s1 + $0x234] ss:$8 sps:$4 sm:$0xff]   ;;  %v1639_v24 = vld [vmem:[%s2249_s1 + $0x230] ss:$8 sps:$4 sm:$0xff]   ;;  %v1644_v25 = vld [vmem:[%s2249_s1 + $0x224] ss:$8 sps:$4 sm:$0xff]  }
  0x42   :  { %751 = vmatprep.subr.bf16.mxu1 %v1576_v29  ;;  %v1642_v26 = vld [vmem:[%s2249_s1 + $0x220] ss:$8 sps:$4 sm:$0xff]   ;;  %v1647_v27 = vld [vmem:[%s2249_s1 + $0x214] ss:$8 sps:$4 sm:$0xff]   ;;  %v1645_v28 = vld [vmem:[%s2249_s1 + $0x210] ss:$8 sps:$4 sm:$0xff]  }
  0x43   :  { %v1650_v29 = vld [vmem:[%s2249_s1 + $0x204] ss:$8 sps:$4 sm:$0xff]   ;;  %v1675_v46 = vld [vmem:[%s2249_s1 + $0x280] ss:$8 sps:$4 sm:$0xff]   ;;  %v1679_v50 = vld [vmem:[#allocation2 + $0x38] sm:$0xff]  }
  0x44   :  { %711 = vmatpush1.bf16.msra.mxu0 %v1575_v30  ;;  %v1648_v30 = vld [vmem:[%s2249_s1 + $0x200] ss:$8 sps:$4 sm:$0xff]   ;;  %v1681_v52 = vld [vmem:[#allocation2 + $0x30] sm:$0xff]  }
  0x45   :  { %712 = vmatprep.subr.bf16.mxu0 %v1579_v31  ;;  %752 = vmatpush1.bf16.msra.mxu1 %v1578_v32  ;;  %v1653_v31 = vld [vmem:[%s2249_s1 + $0x2f4] ss:$8 sps:$4 sm:$0xff]   ;;  %v1651_v32 = vld [vmem:[%s2249_s1 + $0x2f0] ss:$8 sps:$4 sm:$0xff]  }
  0x46   :  { %753 = vmatprep.subr.bf16.mxu1 %v1582_v33  ;;  %v1656_v33 = vld [vmem:[%s2249_s1 + $0x2e4] ss:$8 sps:$4 sm:$0xff]  }
  0x48   :  { %713 = vmatpush2.bf16.msra.mxu0 %v1581_v34  ;;  %v1654_v34 = vld [vmem:[%s2249_s1 + $0x2e0] ss:$8 sps:$4 sm:$0xff]  }
  0x49   :  { %714 = vmatprep.subr.bf16.mxu0 %v1585_v35  ;;  %754 = vmatpush2.bf16.msra.mxu1 %v1584_v36  ;;  %v1659_v35 = vld [vmem:[%s2249_s1 + $0x2d4] ss:$8 sps:$4 sm:$0xff]   ;;  %v1657_v36 = vld [vmem:[%s2249_s1 + $0x2d0] ss:$8 sps:$4 sm:$0xff]  }
  0x4a   :  { %755 = vmatprep.subr.bf16.mxu1 %v1588_v37  ;;  %v1662_v37 = vld [vmem:[%s2249_s1 + $0x2c4] ss:$8 sps:$4 sm:$0xff]  }
  0x4c   :  { %715 = vmatpush2.bf16.msra.mxu0 %v1587_v38  ;;  %v1660_v38 = vld [vmem:[%s2249_s1 + $0x2c0] ss:$8 sps:$4 sm:$0xff]  }
  0x4d   :  { %716 = vmatprep.subr.bf16.mxu0 %v1591_v39  ;;  %756 = vmatpush2.bf16.msra.mxu1 %v1590_v40  ;;  %v1665_v39 = vld [vmem:[%s2249_s1 + $0x2b4] ss:$8 sps:$4 sm:$0xff]   ;;  %v1663_v40 = vld [vmem:[%s2249_s1 + $0x2b0] ss:$8 sps:$4 sm:$0xff]  }
  0x4e   :  { %757 = vmatprep.subr.bf16.mxu1 %v1594_v41  ;;  %v1668_v41 = vld [vmem:[%s2249_s1 + $0x2a4] ss:$8 sps:$4 sm:$0xff]  }
  0x50   :  { %717 = vmatpush2.bf16.msra.mxu0 %v1593_v42  ;;  %v1666_v42 = vld [vmem:[%s2249_s1 + $0x2a0] ss:$8 sps:$4 sm:$0xff]  }
  0x51   :  { %718 = vmatprep.subr.bf16.mxu0 %v1597_v43  ;;  %758 = vmatpush2.bf16.msra.mxu1 %v1596_v44  ;;  %v1671_v43 = vld [vmem:[%s2249_s1 + $0x294] ss:$8 sps:$4 sm:$0xff]   ;;  %v1669_v44 = vld [vmem:[%s2249_s1 + $0x290] ss:$8 sps:$4 sm:$0xff]  }
  0x52   :  { %759 = vmatprep.subr.bf16.mxu1 %v1600_v45  ;;  %v1677_v45 = vld [vmem:[%s2249_s1 + $0x284] ss:$8 sps:$4 sm:$0xff]  }
  0x54   :  { %719 = vmatpush2.bf16.msra.mxu0 %v1599_v47  ;;  %v82_v47 = vld [vmem:[%s2248_s0 + $0x20] sm:$0xff] }
  0x55   :  { %720 = vmatprep.subr.bf16.mxu0 %v1603_v49  ;;  %760 = vmatpush2.bf16.msra.mxu1 %v1602_v51  ;;  %v89_v48 = vpack.c.bf16 %v82_v47, %v82_v47  ;;  %v1678_v49 = vld [vmem:[#allocation2 + $0x78] sm:$0xff]   ;;  %v1680_v51 = vld [vmem:[#allocation2 + $0x70] sm:$0xff]   ;;  %v1704_v47 = vld [vmem:[#allocation7 + $0x28] sm:$0xff]  }
  0x56   :  { %761 = vmatprep.subr.bf16.mxu1 %v1606_v53  ;;  %v1682_v53 = vld [vmem:[#allocation2 + $0x68] sm:$0xff]  }
  0x58   :  { %721 = vmatpush2.bf16.msra.mxu0 %v1605_v54  ;;  %v1683_v54 = vld [vmem:[#allocation2 + $0x28] sm:$0xff]  }
  0x59   :  { %722 = vmatprep.subr.bf16.mxu0 %v1609_v55  ;;  %762 = vmatpush2.bf16.msra.mxu1 %v1608_v56  ;;  %v1684_v55 = vld [vmem:[#allocation2 + $0x60] sm:$0xff]  }
  0x5a   :  { %763 = vmatprep.subr.bf16.mxu1 %v1612_v57  ;;  %v1685_v56 = vld [vmem:[#allocation2 + $0x20] sm:$0xff]   ;;  %v1686_v57 = vld [vmem:[#allocation2 + $0x58] sm:$0xff]  }
  0x5c   :  { %723 = vmatpush2.bf16.msra.mxu0 %v1611_v58  ;;  %v1687_v58 = vld [vmem:[#allocation2 + $0x18] sm:$0xff]  }
  0x5d   :  { %724 = vmatprep.subr.bf16.mxu0 %v1615_v59  ;;  %764 = vmatpush2.bf16.msra.mxu1 %v1614_v60  ;;  %v1688_v59 = vld [vmem:[#allocation2 + $0x50] sm:$0xff]  }
  0x5e   :  { %765 = vmatprep.subr.bf16.mxu1 %v1618_v61  ;;  %v1689_v60 = vld [vmem:[#allocation2 + $0x10] sm:$0xff]   ;;  %v1690_v61 = vld [vmem:[#allocation2 + $0x48] sm:$0xff]  }
  0x60   :  { %725 = vmatpush2.bf16.msra.mxu0 %v1617_v62  ;;  %v1691_v62 = vld [vmem:[#allocation2 + $0x8] sm:$0xff]  }
  0x61   :  { %726 = vmatprep.subr.bf16.mxu0 %v1621_v63  ;;  %766 = vmatpush2.bf16.msra.mxu1 %v1620_v0  ;;  %v1692_v63 = vld [vmem:[#allocation2 + $0x40] sm:$0xff]  }
  0x62   :  { %767 = vmatprep.subr.bf16.mxu1 %v1624_v2  ;;  %v1693_v0 = vld [vmem:[#allocation2] sm:$0xff]  }
  0x64   :  { %727 = vmatpush2.bf16.msra.mxu0 %v1623_v1  ;;  %v1828_v1 = vmov 0.0  }
  0x65   :  { %778 = vmatprep.subr.bf16.mxu0 %v1629_v5  ;;  %768 = vmatpush2.bf16.msra.mxu1 %v1626_v3 }
  0x66   :  { %833 = vmatprep.subr.bf16.mxu1 %v1674_v12 }
  0x67   :  { %729 = vmatmul.mubr.bf16.vlgmr.msra.gmra.mxu0 %v85_v7 }
  0x68   :  { %779 = vmatpush1.bf16.msra.mxu0 %v1627_v8  ;;  %770 = vmatmul.mubr.bf16.vlgmr.msra.gmra.mxu1 %v87_v10 }
  0x69   :  { %780 = vmatprep.subr.bf16.mxu0 %v1632_v9  ;;  %834 = vmatpush1.bf16.msra.mxu1 %v1672_v11 }
  0x6a   :  { %851 = vmatprep.mubr.bf16.mxu1 %v1827_v19  ;;  %810 = vmatprep.mubr.bf16.mxu0 %v90_v17  ;;  %v190_v17 = vld [vmem:[%s2250_s2] sm:$0x3] }
  0x6b   :  { %1441 = vmatprep.subr.bf16.mxu1 %v1678_v49  ;;  %v1706_v49 = vld [vmem:[#allocation7 + $0x18] sm:$0xff]  }
  0x6c   :  { %781 = vmatpush1.bf16.msra.mxu0 %v1630_v13 }
  0x6d   :  { %782 = vmatprep.subr.bf16.mxu0 %v1635_v14  ;;  %v192_v14 = vlaneseq }
  0x6f   :  { %v193_v15 = vshrl.u32 %v192_v14, 7 }
  0x70   :  { %783 = vmatpush1.bf16.msra.mxu0 %v1633_v18  ;;  %1405 = vmatmul.mubr.msk.bf16.vlgmr.msra.gmra.mxu1 %vm692_vm0, %v91_v21 }
  0x71   :  { %784 = vmatprep.subr.bf16.mxu0 %v1638_v20  ;;  %1442 = vmatpush3.bf16.msra.mxu1 %v1679_v50  ;;  %v194_v16 = vsub.s32 0, %v193_v15  ;;  %v198_v18 = vsub.s32 1, %v193_v15  ;;  %v1707_v50 = vld [vmem:[#allocation7 + $0x10] sm:$0xff]  }
  0x72   :  { %1443 = vmatprep.subr.bf16.mxu1 %v1680_v51 }
  0x73   :  { %v195_v19 = vrot.slane %v190_v17, %v194_v16  ;;  %v199_v20 = vrot.slane %v190_v17, %v198_v18 }
  0x74   :  { %785 = vmatpush1.bf16.msra.mxu0 %v1636_v22 }
  0x75   :  { %786 = vmatprep.subr.bf16.mxu0 %v1641_v23  ;;  %1444 = vmatpush3.bf16.msra.mxu1 %v1681_v52  ;;  %v1406_v52 = vld [vmem:[%s2252_s4] ss:$0 sm:$0xff] }
  0x76   :  { %1445 = vmatprep.subr.bf16.mxu1 %v1682_v53 }
  0x78   :  { %787 = vmatpush1.bf16.msra.mxu0 %v1639_v24 }
  0x79   :  { %788 = vmatprep.subr.bf16.mxu0 %v1644_v25  ;;  %1446 = vmatpush3.bf16.msra.mxu1 %v1683_v54 }
  0x7a   :  { %1447 = vmatprep.subr.bf16.mxu1 %v1684_v55 }
  0x7c   :  { %789 = vmatpush1.bf16.msra.mxu0 %v1642_v26 }
  0x7d   :  { %790 = vmatprep.subr.bf16.mxu0 %v1647_v27  ;;  %1448 = vmatpush3.bf16.msra.mxu1 %v1685_v56 }
  0x7e   :  { %1449 = vmatprep.subr.bf16.mxu1 %v1686_v57 }
  0x80   :  { %791 = vmatpush1.bf16.msra.mxu0 %v1645_v28 }
  0x81   :  { %792 = vmatprep.subr.bf16.mxu0 %v1650_v29  ;;  %1450 = vmatpush3.bf16.msra.mxu1 %v1687_v58 }
  0x82   :  { %1451 = vmatprep.subr.bf16.mxu1 %v1688_v59 }
  0x84   :  { %793 = vmatpush1.bf16.msra.mxu0 %v1648_v30 }
  0x85   :  { %794 = vmatprep.subr.bf16.mxu0 %v1653_v31  ;;  %1452 = vmatpush3.bf16.msra.mxu1 %v1689_v60  ;;  %v1708_v60 = vld [vmem:[#allocation7 + $0x8] sm:$0xff]  }
  0x86   :  { %1453 = vmatprep.subr.bf16.mxu1 %v1690_v61  ;;  %v1709_v61 = vld [vmem:[#allocation7] sm:$0xff]  }
  0x88   :  { %795 = vmatpush2.bf16.msra.mxu0 %v1651_v32 }
  0x89   :  { %796 = vmatprep.subr.bf16.mxu0 %v1656_v33  ;;  %1454 = vmatpush3.bf16.msra.mxu1 %v1691_v62  ;;  %v1423_v62 = vld [vmem:[%s2254_s6] ss:$0 sm:$0xff]  ;;  %s1830_s6 = smov [#allocation9]  }
  0x8a   :  { %1455 = vmatprep.subr.bf16.mxu1 %v1692_v63  ;;  %s1293_s15 = sshll.u32 %s1830_s6, 4  ;;  %s1294_s15 = int_to_ptr.vmem [resolvable:$true] %s1293_s15 }
  0x8b   :  { %s1774_s7 = scalar_lea.vmem %s1294_s15, 128  ;;  %p1779_p2 = scmp.lt.s32.totalorder %s1294_s15, %s1294_s15 }
  0x8c   :  { %797 = vmatpush2.bf16.msra.mxu0 %v1654_v34  ;;  %p1775_p1 = scmp.ne.s32.totalorder %s1294_s15, %s1774_s7  ;;  %p1780_p3 = scmp.lt.s32.totalorder %s1774_s7, %s1774_s7 }
  0x8d   :  { %798 = vmatprep.subr.bf16.mxu0 %v1659_v35  ;;  %1456 = vmatpush3.bf16.msra.mxu1 %v1693_v0 }
  0x8e   :  { %1481 = vmatprep.subr.bf16.mxu1 %v1828_v1  ;;  %p1781_p4 = por %p1780_p3, %p1779_p2 }
  0x90   :  { %799 = vmatpush2.bf16.msra.mxu0 %v1657_v36  ;;  %v1694_v36 = vld [vmem:[#allocation5 + $0x38] sm:$0xff]   ;;  %p1782_p5 = pnand %p1781_p4, %p1775_p1 }
  0x91   :  { %800 = vmatprep.subr.bf16.mxu0 %v1662_v37 }
  0x94   :  { %801 = vmatpush2.bf16.msra.mxu0 %v1660_v38  ;;  %v1695_v38 = vld [vmem:[#allocation5 + $0x30] sm:$0xff]  }
  0x95   :  { %802 = vmatprep.subr.bf16.mxu0 %v1665_v39  ;;  %v1696_v39 = vld [vmem:[#allocation5 + $0x28] sm:$0xff]  }
  0x98   :  { %803 = vmatpush2.bf16.msra.mxu0 %v1663_v40  ;;  %v1697_v40 = vld [vmem:[#allocation5 + $0x20] sm:$0xff]  }
  0x99   :  { %804 = vmatprep.subr.bf16.mxu0 %v1668_v41  ;;  %v1698_v41 = vld [vmem:[#allocation5 + $0x18] sm:$0xff]  }
  0x9c   :  { %805 = vmatpush2.bf16.msra.mxu0 %v1666_v42  ;;  %v1699_v42 = vld [vmem:[#allocation5 + $0x10] sm:$0xff]  }
  0x9d   :  { %806 = vmatprep.subr.bf16.mxu0 %v1671_v43  ;;  %v1700_v43 = vld [vmem:[#allocation5 + $0x8] sm:$0xff]  }
  0xa0   :  { %807 = vmatpush2.bf16.msra.mxu0 %v1669_v44  ;;  %v1701_v44 = vld [vmem:[#allocation5] sm:$0xff]  }
  0xa1   :  { %808 = vmatprep.subr.bf16.mxu0 %v1677_v45  ;;  %v1702_v45 = vld [vmem:[#allocation7 + $0x38] sm:$0xff]  }
  0xa4   :  { %809 = vmatpush2.bf16.msra.mxu0 %v1675_v46  ;;  %v1703_v46 = vld [vmem:[#allocation7 + $0x30] sm:$0xff]  }
  0xa5   :  { %1501 = vmatprep.subr.bf16.mxu0 %v1828_v1 }
  0xa7   :  { %811 = vmatmul.mubr.bf16.vlgmr.msra.gmra.mxu0 %v89_v48  ;;  %v1705_v48 = vld [vmem:[#allocation7 + $0x20] sm:$0xff]  }
  0xa8   :  { %1517 = vmatprep.mubr.msk.bf16.mxu0 %vm1829_vm1, %v1828_v1  ;;  %1502 = vmatpush3.bf16.msra.mxu0 %v1702_v45 }
  0xa9   :  { %1503 = vmatprep.subr.bf16.mxu0 %v1828_v1 }
  0xac   :  { %1504 = vmatpush3.bf16.msra.mxu0 %v1703_v46 }
  0xad   :  { %1505 = vmatprep.subr.bf16.mxu0 %v1828_v1 }
  0xb0   :  { %1506 = vmatpush3.bf16.msra.mxu0 %v1704_v47 }
  0xb1   :  { %1507 = vmatprep.subr.bf16.mxu0 %v1828_v1 }
  0xb4   :  { %1508 = vmatpush3.bf16.msra.mxu0 %v1705_v48 }
  0xb5   :  { %1509 = vmatprep.subr.bf16.mxu0 %v1828_v1 }
  0xb8   :  { %1510 = vmatpush3.bf16.msra.mxu0 %v1706_v49 }
  0xb9   :  { %1511 = vmatprep.subr.bf16.mxu0 %v1828_v1 }
  0xbc   :  { %1512 = vmatpush3.bf16.msra.mxu0 %v1707_v50 }
  0xbd   :  { %1513 = vmatprep.subr.bf16.mxu0 %v1828_v1 }
  0xc0   :  { %1514 = vmatpush3.bf16.msra.mxu0 %v1708_v60 }
  0xc1   :  { %1515 = vmatprep.subr.bf16.mxu0 %v1828_v1 }
  0xc4   :  { %1516 = vmatpush3.bf16.msra.mxu0 %v1709_v61 }
 0x127   :  { %v730_v2 = vpop.f32.mrf.mxu0 }
 0x128   :  { %v771_v4 = vpop.f32.mrf.mxu1  ;;  %v731_v21 = vadd.f32 %v730_v2, %v195_v19 }
 0x129   :  { %v732_v3 = vpop.f32.mrf.mxu0 }
 0x12a   :  { %v773_v6 = vpop.f32.mrf.mxu1  ;;  %v733_v22 = vadd.f32 %v732_v3, %v199_v20  ;;  %v772_v23 = vadd.f32 %v771_v4, %v731_v21 }
 0x12b   :  { %v734_v5 = vpop.f32.mrf.mxu0 }
 0x12c   :  { %v775_v8 = vpop.f32.mrf.mxu1  ;;  %v774_v25 = vadd.f32 %v773_v6, %v733_v22 }
 0x12d   :  { %v735_v7 = vpop.f32.mrf.mxu0 }
 0x12e   :  { %v776_v9 = vpop.f32.mrf.mxu1  ;;  %v1432_v7 = vld [vmem:[%s2256_s8] ss:$0 sm:$0xff] }
 0x130   :  { %v853_v10 = vpop.f32.mrf.mxu1 }
 0x132   :  { %v855_v11 = vpop.f32.mrf.mxu1 }
 0x134   :  { %v857_v12 = vpop.f32.mrf.mxu1 }
 0x136   :  { %v858_v13 = vpop.f32.mrf.mxu1 }
 0x167   :  { %v812_v24 = vpop.f32.mrf.mxu0 }
 0x168   :  { %v813_v26 = vadd.f32 %v812_v24, %v772_v23 }
 0x169   :  { %v814_v27 = vpop.f32.mrf.mxu0 }
 0x16a   :  { %v854_v28 = vadd.f32 %v853_v10, %v813_v26  ;;  %v815_v29 = vadd.f32 %v814_v27, %v774_v25 }
 0x16b   :  { %v816_v30 = vpop.f32.mrf.mxu0 }
 0x16c   :  { %v856_v31 = vadd.f32 %v855_v11, %v815_v29  ;;  %v860_v32 = vmax.f32 %v854_v28, 0.0 }
 0x16d   :  { %v817_v33 = vpop.f32.mrf.mxu0 }
 0x16e   :  { %v861_v34 = vmax.f32 %v856_v31, 0.0  ;;  %v862_v37 = vpack.c.bf16 %v860_v32, %v860_v32 }
 0x170   :  { %v863_v35 = vpack.c.bf16 %v861_v34, %v861_v34 }
 0x172   :  { %1031 = vmatprep.mubr.bf16.mxu1 %v863_v35 }
 0x173   :  { %1032 = vmatmul.mubr.bf16.vlgmr.msra.gmra.mxu1 %v862_v37 }
 0x174   :  { %1482 = vmatpush3.bf16.msra.mxu1 %v1694_v36  ;;  %1497 = vmatprep.mubr.msk.bf16.mxu1 %vm1829_vm1, %v1828_v1 }
 0x175   :  { %1483 = vmatprep.subr.bf16.mxu1 %v1828_v1 }
 0x178   :  { %1484 = vmatpush3.bf16.msra.mxu1 %v1695_v38 }
 0x179   :  { %1485 = vmatprep.subr.bf16.mxu1 %v1828_v1 }
 0x17c   :  { %1486 = vmatpush3.bf16.msra.mxu1 %v1696_v39 }
 0x17d   :  { %1487 = vmatprep.subr.bf16.mxu1 %v1828_v1 }
 0x180   :  { %1488 = vmatpush3.bf16.msra.mxu1 %v1697_v40 }
 0x181   :  { %1489 = vmatprep.subr.bf16.mxu1 %v1828_v1 }
 0x184   :  { %1490 = vmatpush3.bf16.msra.mxu1 %v1698_v41 }
 0x185   :  { %1491 = vmatprep.subr.bf16.mxu1 %v1828_v1 }
 0x188   :  { %1492 = vmatpush3.bf16.msra.mxu1 %v1699_v42 }
 0x189   :  { %1493 = vmatprep.subr.bf16.mxu1 %v1828_v1 }
 0x18c   :  { %1494 = vmatpush3.bf16.msra.mxu1 %v1700_v43 }
 0x18d   :  { %1495 = vmatprep.subr.bf16.mxu1 %v1828_v1 }
 0x190   :  { %1496 = vmatpush3.bf16.msra.mxu1 %v1701_v44 }
 0x233   :  { %v1457_v51 = vpop.f32.mrf.mxu1 }
 0x235   :  { %v1458_v53 = vpop.f32.mrf.mxu1 }
 0x236   :  { %v1459_v54 = vadd.f32 %v1458_v53, %v1457_v51 }
 0x237   :  { %v1460_v55 = vpop.f32.mrf.mxu1 }
 0x238   :  { %v1034_v56 = vadd.f32 %v1459_v54, %v1406_v52 }
 0x239   :  { %v1461_v57 = vpop.f32.mrf.mxu1 }
 0x23a   :  { %v1039_v58 = vmax.f32 %v1034_v56, 0.0 }
 0x23c   :  { %v1041_v59 = vpack.c.bf16 %v1039_v58, %v1039_v58  ;;  %1040 = vst [vmem:[#allocation9] sm:$0xff] %v1039_v58 }
 0x23e   :  { %1498 = vmatmul.mubr.bf16.vlgmr.msra.gmra.mxu1 %v1041_v59 }
 0x2fe   :  { %v1147_v63 = vpop.f32.mrf.mxu1 }
 0x2ff   :  { %v1148_v0 = vadd.f32 %v1423_v62, %v1147_v63 }
 0x300   :  { %v1499_v2 = vpop.f32.mrf.mxu1 }
 0x301   :  { %v1153_v3 = vmax.f32 %v1148_v0, 0.0 }
 0x302   :  { %v1150_v4 = vpop.f32.mrf.mxu1 }
 0x303   :  { %v1154_v5 = vpack.c.bf16 %v1153_v3, %v1153_v3 }
 0x304   :  { %v1500_v6 = vpop.f32.mrf.mxu1 }
 0x305   :  { %1518 = vmatmul.mubr.bf16.vlgmr.msra.gmra.mxu0 %v1154_v5 }
 0x3c5   :  { %v1260_v8 = vpop.f32.mrf.mxu0 }
 0x3c6   :  { %v1261_v1 = vadd.f32 %v1432_v7, %v1260_v8 }
 0x3c7   :  { %v1519_v9 = vpop.f32.mrf.mxu0 }
 0x3c8   :  { %1266 = vmax.xlane.f32.xlu0 %v1261_v1 }
 0x3c9   :  { %v1263_v10 = vpop.f32.mrf.mxu0 }
 0x3cb   :  { %v1520_v11 = vpop.f32.mrf.mxu0 }
 0x451   :  { %v1267_v12 = vpop.xlane.xlu0 %1266 }
 0x452   :  { %v1268_v13 = vsub.f32 %v1261_v1, %v1267_v12 }
 0x454   :  { %v1269_v14 = vmul.f32 1.442695, %v1268_v13 }
 0x456   :  { %1710 = vpow2.f32 %v1269_v14 }
 0x463   :  { %v1711_v15 = vpop.eup %1710 }
 0x464   :  { %1271 = vadd.xlane.f32.xlu0 %v1711_v15 }
 0x465   :  { %1785 = shalt.err (!%p1782_p5)
}
 0x466   :  { %1296 = dma.vmem_to_hbm [thread:$0]  %s1294_s15, 128, %s2258_s10, [#allocation10]  }
 0x467   :  { %s1831_s17 = smov [#allocation8]  }
 0x468   :  { %s1283_s18 = sshll.u32 %s1831_s17, 4  ;;  %s1284_s18 = int_to_ptr.vmem [resolvable:$true] %s1283_s18 }
 0x469   :  { %s1794_s19 = scalar_lea.vmem %s1284_s18, 128  ;;  %p1799_p7 = scmp.lt.s32.totalorder %s1284_s18, %s1284_s18 }
 0x46a   :  { %p1795_p6 = scmp.ne.s32.totalorder %s1284_s18, %s1794_s19  ;;  %p1800_p8 = scmp.lt.s32.totalorder %s1794_s19, %s1794_s19 }
 0x46c   :  { %p1801_p9 = por %p1800_p8, %p1799_p7 }
 0x46e   :  { %p1802_p10 = pnand %p1801_p9, %p1795_p6 }
 0x4ed   :  { %v1272_v16 = vpop.xlane.xlu0 %1271 }
 0x4ee   :  { %1712 = vlog2.f32 %v1272_v16 }
 0x4fb   :  { %v1713_v17 = vpop.eup %1712 }
 0x4fc   :  { %v1274_v18 = vmul.f32 0.6931472, %v1713_v17 }
 0x4fe   :  { %v1275_v19 = vsub.f32 %v1268_v13, %v1274_v18 }
 0x500   :  { %1276 = vst [vmem:[#allocation8] sm:$0xff] %v1275_v19 }
 0x501   :  { %1805 = shalt.err (!%p1802_p10)
}
 0x502   :  { %1286 = dma.vmem_to_hbm [thread:$0]  %s1284_s18, 128, %s2257_s9, [#allocation4]  }
 0x503   :  { %1818 = dma.done.wait [#allocation4], 128  }
 0x504   :  { %1819 = vsyncadd [#allocation4], 4294967168 }
 0x505   :  { %1820 = dma.done.wait [#allocation10], 128  }
 0x506   :  { %1821 = vsyncadd [#allocation10], 4294967168 }
 0x507   :  { %1303 = vsyncpa [#allocation3], 1 }
 0x508   :  { %1304 = vsyncpa [#allocation6], 1 }
 0x509   :  { %1305 = vsyncpa [#allocation4], 1 }
 0x50a   :  { %1306 = vsyncpa [#allocation10], 1 }

</bundles_post_ra>
